<compile_context>
chip_gen: v6e
topology: v6e:2x2x1
jax: 0.10.0
libtpu: 0.0.40
codegen_flags: <defaults>
</compile_context>

<pallas_src>
import functools

import jax
import jax.numpy as jnp
from jax.experimental import pallas as pl
from jax.experimental.pallas import tpu as pltpu


_VMEM_BUDGET_BYTES = 16 * 1024 * 1024  # conservative working-set budget


def _sublane(itemsize):
    return {4: 8, 2: 16, 1: 32}.get(itemsize, 8)


# ----------------------------------------------------------------------------
# LayerNorm kernel (torch.std semantics: unbiased variance, std + eps)
# ----------------------------------------------------------------------------
def _layernorm_kernel(x_ref, a_ref, b_ref, o_ref, *, eps, feat):
    # x_ref: (tile_rows, feat) ; a_ref, b_ref: (1, feat)
    x = x_ref[...].astype(jnp.float32)
    mean = jnp.mean(x, axis=-1, keepdims=True)
    diff = x - mean
    # torch.std defaults to the unbiased estimator (ddof=1)
    var = jnp.sum(diff * diff, axis=-1, keepdims=True) / (feat - 1)
    std = jnp.sqrt(var)
    denom = std + eps                                    # (tile_rows, 1)
    # Approximate reciprocal on the EUP (separate VLIW slot), then one
    # Newton-Raphson step to restore ~full f32 precision with cheap VPU muls.
    inv = pl.reciprocal(denom, approx=True)
    inv = inv * (2.0 - denom * inv)
    a = a_ref[...].astype(jnp.float32)
    b = b_ref[...].astype(jnp.float32)
    y = a * (diff * inv) + b
    o_ref[...] = y.astype(o_ref.dtype)


def _pick_tile_rows(rows, feat, itemsize):
    """Largest sublane-aligned row tile fitting the VMEM budget."""
    sublane = _sublane(itemsize)
    # Working set: input tile + output tile, each double-buffered -> ~4 tiles.
    max_tile = _VMEM_BUDGET_BYTES // (4 * feat * itemsize)
    max_tile = min(max_tile, 2048)
    max_tile = max(sublane, (max_tile // sublane) * sublane)
    if rows <= max_tile:
        return rows  # single full-extent block (no divisibility constraint)
    tile = max_tile
    # Keep >= 4 grid steps so both v7x TensorCores get work and the DMA
    # pipeline has iterations to fill.
    while tile > sublane and pl.cdiv(rows, tile) < 4:
        tile = max(sublane, (tile // 2 // sublane) * sublane)
    return tile


def layer_norm(x, a_2, b_2, eps=1e-6, tile_rows=None):
    """x: (..., features). Normalizes over the last axis (PyTorch-style)."""
    orig_shape = x.shape
    feat = orig_shape[-1]
    assert feat > 1, "unbiased-std LayerNorm requires features > 1"
    rows = 1
    for d in orig_shape[:-1]:
        rows *= d
    x2 = x.reshape(rows, feat)
    a2 = a_2.reshape(1, feat)
    b2 = b_2.reshape(1, feat)

    itemsize = jnp.dtype(x.dtype).itemsize
    sublane = _sublane(itemsize)
    if tile_rows is None:
        tile_rows = _pick_tile_rows(rows, feat, itemsize)
    if tile_rows < rows:
        assert tile_rows % sublane == 0, "tile_rows must be sublane aligned"

    # Pad ragged row counts to a tile multiple instead of asserting.
    padded_rows = pl.cdiv(rows, tile_rows) * tile_rows
    if padded_rows != rows:
        x2 = jnp.pad(x2, ((0, padded_rows - rows), (0, 0)))

    grid = (padded_rows // tile_rows,)
    kernel = functools.partial(_layernorm_kernel, eps=eps, feat=feat)

    out = pl.pallas_call(
        kernel,
        out_shape=jax.ShapeDtypeStruct((padded_rows, feat), x.dtype),
        grid_spec=pltpu.PrefetchScalarGridSpec(
            num_scalar_prefetch=0,
            grid=grid,
            in_specs=[
                pl.BlockSpec((tile_rows, feat), lambda i: (i, 0)),
                pl.BlockSpec((1, feat), lambda i: (0, 0)),
                pl.BlockSpec((1, feat), lambda i: (0, 0)),
            ],
            out_specs=pl.BlockSpec((tile_rows, feat), lambda i: (i, 0)),
        ),
        compiler_params=pltpu.CompilerParams(
            dimension_semantics=("parallel",),
            # Raise the scoped VMEM limit (v5e default is only 16 MiB) while
            # staying well inside v7x's 64 MiB physical VMEM.
            vmem_limit_bytes=32 * 1024 * 1024,
        ),
    )(x2, a2, b2)

    if padded_rows != rows:
        out = out[:rows]
    return out.reshape(orig_shape)


# ----------------------------------------------------------------------------
# Positional-embedding add kernel:  x (B,S,D) + pos (1,S,D)
#
# Flattened to a lane-dense 2-D layout (B, S*D) so stores use the full
# 128-lane width instead of masked D-wide (e.g. 32-lane) partial stores.
# ----------------------------------------------------------------------------
def _add_bcast_rows_kernel(x_ref, p_ref, o_ref):
    # x_ref: (tile_r, tile_c) ; p_ref: (1, tile_c) broadcast over rows.
    o_ref[...] = x_ref[...] + p_ref[...]


def _pick_add_tiles(rows, cols, itemsize):
    """(tile_r, tile_c) keeping ~4 double-buffered tiles under the budget."""
    sublane = _sublane(itemsize)
    if 4 * sublane * cols * itemsize <= _VMEM_BUDGET_BYTES:
        tile_c = cols                       # full extent: no 128-alignment need
    else:
        tile_c = (_VMEM_BUDGET_BYTES // (4 * sublane * itemsize) // 128) * 128
        tile_c = max(128, tile_c)
    max_r = _VMEM_BUDGET_BYTES // (4 * tile_c * itemsize)
    max_r = max(sublane, (max_r // sublane) * sublane)
    if rows <= max_r:
        return rows, tile_c                 # single full-extent row block
    tile_r = max_r
    while tile_r > sublane and pl.cdiv(rows, tile_r) < 4:
        tile_r = max(sublane, (tile_r // 2 // sublane) * sublane)
    return tile_r, tile_c


def add_pos_embedding(x, pos):
    B, S, D = x.shape
    assert pos.shape == (1, S, D)
    cols = S * D
    x2 = x.reshape(B, cols)
    p2 = pos.reshape(1, cols)

    itemsize = jnp.dtype(x.dtype).itemsize
    tile_r, tile_c = _pick_add_tiles(B, cols, itemsize)

    pad_r = pl.cdiv(B, tile_r) * tile_r - B
    pad_c = pl.cdiv(cols, tile_c) * tile_c - cols
    if pad_r or pad_c:
        x2 = jnp.pad(x2, ((0, pad_r), (0, pad_c)))
    if pad_c:
        p2 = jnp.pad(p2, ((0, 0), (0, pad_c)))
    R, C = B + pad_r, cols + pad_c
    grid = (R // tile_r, C // tile_c)

    out = pl.pallas_call(
        _add_bcast_rows_kernel,
        out_shape=jax.ShapeDtypeStruct((R, C), x.dtype),
        grid_spec=pltpu.PrefetchScalarGridSpec(
            num_scalar_prefetch=0,
            grid=grid,
            in_specs=[
                pl.BlockSpec((tile_r, tile_c), lambda i, j: (i, j)),
                pl.BlockSpec((1, tile_c), lambda i, j: (0, j)),
            ],
            out_specs=pl.BlockSpec((tile_r, tile_c), lambda i, j: (i, j)),
        ),
        compiler_params=pltpu.CompilerParams(
            dimension_semantics=("parallel", "parallel"),
            vmem_limit_bytes=32 * 1024 * 1024,
        ),
    )(x2, p2)

    if pad_r or pad_c:
        out = out[:B, :cols]
    return out.reshape(B, S, D)


# ----------------------------------------------------------------------------
# Decoder.forward equivalent
# ----------------------------------------------------------------------------
def decoder_forward(x, mask, layers, pos_embeddings):
    """Mirrors Decoder.forward: add the level-specific positional embedding
    for the first three layers, then apply the (caller-supplied) layer."""
    for i, layer in enumerate(layers):
        if i < 3 and i < len(pos_embeddings):
            x = add_pos_embedding(x, pos_embeddings[i])
        x = layer(x, mask)
    return x


# ----------------------------------------------------------------------------
# Pure-JAX reference (torch semantics: unbiased std, std + eps)
# ----------------------------------------------------------------------------
def layer_norm_ref(x, a_2, b_2, eps=1e-6):
    xf = x.astype(jnp.float32)
    mean = jnp.mean(xf, axis=-1, keepdims=True)
    diff = xf - mean
    var = jnp.sum(diff * diff, axis=-1, keepdims=True) / (x.shape[-1] - 1)
    std = jnp.sqrt(var)
    return (a_2 * diff / (std + eps) + b_2).astype(x.dtype)


if __name__ == "__main__":
    key = jax.random.PRNGKey(0)
    batch, seq_len, d_model = 2, 9, 32
    k1, k2, k3, k4, k5, k6 = jax.random.split(key, 6)

    x = jax.random.normal(k1, (batch, seq_len, d_model), dtype=jnp.float32)
    pos_1 = jax.random.normal(k2, (1, seq_len, d_model), dtype=jnp.float32)
    # pos_embedding_2 / pos_embedding_3 have shapes (1, seq//3, d1), (1, seq//9, d2);
    # they are only consumed after the opaque down-sampling layers (see TODO).
    pos_2 = jax.random.normal(k5, (1, seq_len // 3, d_model), dtype=jnp.float32)
    pos_3 = jax.random.normal(k6, (1, seq_len // 9, d_model), dtype=jnp.float32)

    a_2 = jnp.ones((d_model,), dtype=jnp.float32)
    b_2 = jnp.zeros((d_model,), dtype=jnp.float32)

    # TODO(synk): DecoderLayer internals (attention / FFN / the temporal
    # down-sampling implied by pos_embedding_2/3 shapes) are not part of the
    # provided spec; the Pallas LayerNorm stands in as the per-layer transform.
    layers = [lambda h, m: layer_norm(h, a_2, b_2, eps=1e-6)]

    out = decoder_forward(x, None, layers, [pos_1, pos_2, pos_3])
    out = jax.block_until_ready(out)

    ref = layer_norm_ref(x + pos_1, a_2, b_2, eps=1e-6)
    assert out.shape == x.shape
    assert jnp.allclose(out, ref, atol=1e-4, rtol=1e-4), "decoder mismatch"

    # Exercise the tiled + row-padded LayerNorm path (rows=2500, feat=256).
    xb = jax.random.normal(k3, (5, 500, 256), dtype=jnp.float32)
    ab = jax.random.normal(k4, (256,), dtype=jnp.float32) * 0.1 + 1.0
    bb = jnp.zeros((256,), dtype=jnp.float32)
    outb = jax.block_until_ready(layer_norm(xb, ab, bb, eps=1e-6))
    refb = layer_norm_ref(xb, ab, bb, eps=1e-6)
    assert jnp.allclose(outb, refb, atol=1e-4, rtol=1e-4), "tiled LN mismatch"

    # Exercise the lane-dense positional-add path at a larger shape.
    xc = jax.random.normal(k3, (4, 64, 512), dtype=jnp.float32)
    pc = jax.random.normal(k4, (1, 64, 512), dtype=jnp.float32)
    outc = jax.block_until_ready(add_pos_embedding(xc, pc))
    assert jnp.allclose(outc, xc + pc, atol=1e-6, rtol=1e-6), "pos-add mismatch"

    print("KERNEL_OK")
</pallas_src>

<mosaic_0001>
module attributes {stable_mosaic.version = 11 : i64} {
  func.func @_add_bcast_rows_kernel(%arg0: i32, %arg1: i32, %arg2: memref<2x288xf32, #tpu.memory_space<vmem>>, %arg3: memref<1x288xf32, #tpu.memory_space<vmem>>, %arg4: memref<2x288xf32, #tpu.memory_space<vmem>>) attributes {dimension_semantics = [#tpu.dimension_semantics<parallel>, #tpu.dimension_semantics<parallel>], iteration_bounds = array<i64: 1, 1>, scalar_prefetch = 0 : i64, scratch_operands = 0 : i64, tpu.core_type = #tpu.core_type<tc>, window_params = [{transform_indices = @transform_0, window_bounds = array<i64: 2, 288>}, {transform_indices = @transform_1, window_bounds = array<i64: 1, 288>}, {transform_indices = @transform_2, window_bounds = array<i64: 2, 288>}]} {
    %c0 = arith.constant 0 : index
    %c0_0 = arith.constant 0 : index
    %0 = vector.load %arg2[%c0, %c0_0] : memref<2x288xf32, #tpu.memory_space<vmem>>, vector<2x288xf32>
    %c0_1 = arith.constant 0 : index
    %c0_2 = arith.constant 0 : index
    %1 = vector.load %arg3[%c0_1, %c0_2] : memref<1x288xf32, #tpu.memory_space<vmem>>, vector<1x288xf32>
    %2 = vector.broadcast %1 : vector<1x288xf32> to vector<2x288xf32>
    %3 = arith.addf %0, %2 : vector<2x288xf32>
    %c0_3 = arith.constant 0 : index
    %c0_4 = arith.constant 0 : index
    %4 = vector.load %arg4[%c0_3, %c0_4] : memref<2x288xf32, #tpu.memory_space<vmem>>, vector<2x288xf32>
    tpu.vector_store %arg4[%c0_3, %c0_4], %3 {strides = array<i32>} : memref<2x288xf32, #tpu.memory_space<vmem>>, vector<2x288xf32>,
    return
  }
  func.func @transform_0(%arg0: i32, %arg1: i32) -> (i32, i32) {
    %c0_i32 = arith.constant 0 : i32
    return %arg0, %arg1 : i32, i32
  }
  func.func @transform_1(%arg0: i32, %arg1: i32) -> (i32, i32) {
    %c0_i32 = arith.constant 0 : i32
    %c0_i32_0 = arith.constant 0 : i32
    return %c0_i32, %arg1 : i32, i32
  }
  func.func @transform_2(%arg0: i32, %arg1: i32) -> (i32, i32) {
    %c0_i32 = arith.constant 0 : i32
    return %arg0, %arg1 : i32, i32
  }
}

</mosaic_0001>

<bundles_post_ra>
// kernel: tpu_custom_call.1
= control target key start
LH: loop header
LB: loop body
LE: loop exit
PB: predicated region body
PF: predicated region fallthrough
CT: control target
= control target key end

     0   :  { %7 = vsyncpa [#allocation3], 0  ;;  %s189_s0 = inlined_call_operand.hbm [shape: f32[2,288], index: 0, kind: input, shape index: {}]   ;;  %s190_s1 = inlined_call_operand.hbm [shape: f32[1,288], index: 1, kind: input, shape index: {}]   ;;  %s191_s2 = inlined_call_operand.hbm [shape: f32[2,288], index: 2, kind: output, shape index: {}]  }
   0x1   :  { %8 = vsyncpa [#allocation6], 0 }
   0x2   :  { %9 = vsyncpa [#allocation4], 0  ;;  %s161_s9 = smov [#allocation2]   ;;  %s162_s11 = smov [#allocation5]  }
   0x3   :  { %s16_s10 = sshll.u32 %s161_s9, 4  ;;  %s26_s12 = sshll.u32 %s162_s11, 4  ;;  %s17_s10 = int_to_ptr.vmem [resolvable:$true] %s16_s10  ;;  %s27_s12 = int_to_ptr.vmem [resolvable:$true] %s26_s12 }
   0x4   :  { %s103_s13 = scalar_lea.vmem %s17_s10, 96  ;;  %p108_p1 = scmp.lt.s32.totalorder %s17_s10, %s17_s10 }
   0x5   :  { %p104_p0 = scmp.ne.s32.totalorder %s17_s10, %s103_s13  ;;  %p109_p2 = scmp.lt.s32.totalorder %s103_s13, %s103_s13 }
   0x7   :  { %p110_p3 = por %p109_p2, %p108_p1 }
   0x9   :  { %p111_p4 = pnand %p110_p3, %p104_p0 }
   0xb   :  { %114 = shalt.err (!%p111_p4)
}
   0xc   :  { %19 = dma.hbm_to_vmem [thread:$0]  %s189_s0, 96, %s17_s10, [#allocation3]  }
   0xd   :  { %s123_s16 = scalar_lea.vmem %s27_s12, 48  ;;  %s127_s17 = scalar_lea.vmem %s27_s12, 64 }
   0xe   :  { %p124_p5 = scmp.ne.s32.totalorder %s27_s12, %s123_s16  ;;  %p128_p6 = scmp.lt.s32.totalorder %s27_s12, %s27_s12 }
   0xf   :  { %p129_p7 = scmp.lt.s32.totalorder %s127_s17, %s123_s16 }
  0x11   :  { %p130_p8 = por %p129_p7, %p128_p6 }
  0x13   :  { %p131_p9 = pnand %p130_p8, %p124_p5 }
  0x15   :  { %134 = shalt.err (!%p131_p9)
}
  0x16   :  { %29 = dma.hbm_to_vmem [thread:$0]  %s190_s1, 48, %s27_s12, [#allocation6]  }
  0x17   :  { %155 = dma.done.wait [#allocation3], 96  }
  0x18   :  { %156 = vsyncadd [#allocation3], 4294967200 }
  0x19   :  { %157 = dma.done.wait [#allocation6], 48  }
  0x1a   :  { %158 = vsyncadd [#allocation6], 4294967248  ;;  %v39_v0 = vlaneseq  ;;  %v163_v1 = vmov 1983009808   ;;  %v37_v9 = vld [vmem:[#allocation5] sm:$0x7] }
  0x1b   :  { %v53_v2 = vunpack.c.l.s4 %v163_v1  ;;  %vm69_vm0 = vcmask 1041408   ;;  %vm70_vm1 = vcmask 1043458   ;;  %vm72_vm3 = vcmask 259076   ;;  %v36_v16 = vld [vmem:[#allocation2] sm:$0x3f]  ;;  %s164_s0 = smov [#allocation7]  }
  0x1c   :  { %v40_v3 = vshrl.u32 %v39_v0, 7  ;;  %vm71_vm2 = vmor %vm70_vm1, %vm69_vm0  ;;  %s81_s1 = sshll.u32 %s164_s0, 4  ;;  %s82_s1 = int_to_ptr.vmem [resolvable:$true] %s81_s1 }
  0x1d   :  { %v54_v4 = vunpack.c.0.s8 %v53_v2  ;;  %vm73_vm4 = vmor %vm72_vm3, %vm71_vm2  ;;  %s135_s20 = scalar_lea.vmem %s82_s1, 96  ;;  %p140_p11 = scmp.lt.s32.totalorder %s82_s1, %s82_s1 }
  0x1e   :  { %v41_v5 = vsub.s32 0, %v40_v3  ;;  %v45_v6 = vsub.s32 1, %v40_v3  ;;  %v49_v7 = vsub.s32 2, %v40_v3  ;;  %p136_p10 = scmp.ne.s32.totalorder %s82_s1, %s135_s20  ;;  %p141_p12 = scmp.lt.s32.totalorder %s135_s20, %s135_s20 }
  0x1f   :  { %v57_v8 = vsub.s32 %v54_v4, %v40_v3 }
  0x20   :  { %v42_v10 = vrot.slane %v37_v9, %v41_v5  ;;  %v46_v11 = vrot.slane %v37_v9, %v45_v6  ;;  %v50_v12 = vrot.slane %v37_v9, %v49_v7  ;;  %p142_p13 = por %p141_p12, %p140_p11 }
  0x22   :  { %v51_v13 = vcombine.low %v42_v10, %v46_v11  ;;  %v65_v14 = vrot.slane %v50_v12, %v57_v8  ;;  %p143_p0 = pnand %p142_p13, %p136_p10 }
  0x24   :  { %v58_v15 = vrot.slane %v51_v13, %v57_v8 }
  0x26   :  { %v66_v17 = vcombine.low %v58_v15, %v65_v14 }
  0x28   :  { %v68_v18 = vadd.f32 %v66_v17, %v36_v16 }
  0x2a   :  { %74 = vst.msk [vmem:[#allocation7] sm:$0x3f] %vm73_vm4, %v68_v18 }
  0x2b   :  { %146 = shalt.err (!%p143_p0)
}
  0x2c   :  { %84 = dma.vmem_to_hbm [thread:$0]  %s82_s1, 96, %s191_s2, [#allocation4]  }
  0x2d   :  { %159 = dma.done.wait [#allocation4], 96  }
  0x2e   :  { %160 = vsyncadd [#allocation4], 4294967200 }
  0x2f   :  { %88 = vsyncpa [#allocation3], 1 }
  0x30   :  { %89 = vsyncpa [#allocation6], 1 }
  0x31   :  { %90 = vsyncpa [#allocation4], 1 }

</bundles_post_ra>
